<compile_context>
chip_gen: v6e
topology: v6e:2x2x1
jax: 0.10.0
libtpu: 0.0.40
codegen_flags: <defaults>
</compile_context>

<pallas_src>
import functools

import jax
import jax.numpy as jnp
from jax.experimental import pallas as pl
from jax.experimental.pallas import tpu as pltpu

LEAKY_SLOPE = 0.1  # conv2d_lrelu = Conv2d + LeakyReLU(0.1)


def _basic_block_kernel(x_ref, w1_ref, b1_ref, w2_ref, b2_ref, out_ref, *,
                        n_rows_per_image):
    """Single invocation; all operands VMEM-resident.

    x_ref  : (N*H, W*C)      lane-dense f32 input
    w1_ref : (3*W*C, W*C)    conv1 weights, row+column taps folded (bf16)
    b1_ref : (1, W*C)        conv1 bias tiled over W (f32)
    w2_ref : (3*W*C, W*C)    conv2 weights (bf16)
    b2_ref : (1, W*C)        conv2 bias (f32)
    out_ref: (N*H, W*C)
    """
    NH, WC = out_ref.shape
    H = n_rows_per_image
    N = NH // H

    # Row-within-image index (no integer modulo needed): masks implement the
    # H-boundary zero padding of the dh=-1 / dh=+1 taps and also zero the roll
    # wraparound between images / across the whole flattened array.
    row_in_img = jax.lax.broadcasted_iota(jnp.int32, (N, H, WC), 1).reshape(NH, WC)
    has_prev = row_in_img != 0          # dh = -1 source row exists
    has_next = row_in_img != (H - 1)    # dh = +1 source row exists
    fzero = jnp.zeros((NH, WC), jnp.float32)

    def conv3x3(src_f32, w_ref):
        # Row taps live on the matmul K axis: one (NH, 3*WC) @ (3*WC, WC) MXU
        # matmul per conv (bf16 operands, f32 accumulation).
        prev = jnp.where(has_prev, pltpu.roll(src_f32, shift=1, axis=0), fzero)
        nxt = jnp.where(has_next, pltpu.roll(src_f32, shift=NH - 1, axis=0),
                        fzero)  # shift NH-1 == -1 (mod NH)
        lhs = jnp.concatenate(
            [prev.astype(jnp.bfloat16),
             src_f32.astype(jnp.bfloat16),
             nxt.astype(jnp.bfloat16)],
            axis=-1)                                               # (NH, 3*WC)
        return jnp.dot(lhs, w_ref[...], preferred_element_type=jnp.float32)

    # conv1 + bias + LeakyReLU(0.1)   (elementwise math in f32)
    act = conv3x3(x_ref[...], w1_ref) + b1_ref[...]
    act = jnp.maximum(act, LEAKY_SLOPE * act)      # single vmax, no cmp+select

    # conv2 + bias + residual (re-read the VMEM-resident input)
    out = conv3x3(act, w2_ref) + b2_ref[...] + x_ref[...]
    out_ref[...] = out.astype(out_ref.dtype)


def _fold_conv3x3_weights(w_oihw, width):
    """OIHW (Cout, Cin, 3, 3) -> (3*W*Cin, W*Cout) block-banded MXU weight.

    Row block kh (rows [kh*W*Cin, (kh+1)*W*Cin)) holds
        M_kh[j'*Cin + ci, j*Cout + co] = w[co, ci, kh, j'-j+1]  if |j'-j| <= 1 else 0
    so  out[n, i, j, co] = sum_{kh, j', ci} x[n, i+kh-1, j', ci] * M_kh[...],
    i.e. both the kw taps and the W-boundary zero padding are encoded in the
    matrix, and the kh taps are summed by the MXU along K.  Runs in the wrapper
    (XLA), once per parameter set — not in the kernel, not per call.
    """
    cout, cin = w_oihw.shape[0], w_oihw.shape[1]
    w_hwio = jnp.transpose(w_oihw, (2, 3, 1, 0)).astype(jnp.float32)  # (3,3,Cin,Cout)
    blocks = []
    for kh in range(3):
        m = jnp.zeros((width * cin, width * cout), jnp.float32)
        for kw in range(3):
            # S[j', j] = 1  iff  j' = j + (kw - 1)   (zero pad at W boundary)
            shift = jnp.eye(width, k=-(kw - 1), dtype=jnp.float32)
            m = m + jnp.kron(shift, w_hwio[kh, kw])
        blocks.append(m)
    return jnp.concatenate(blocks, axis=0)        # (3*W*Cin, W*Cout)


def prepare_basic_block_params(w1_oihw, b1, w2_oihw, b2, width):
    """Fold weights / tile biases ONCE per parameter set (hoisted out of the
    per-call hot path; the folded weights dominate the kernel's HBM traffic)."""
    w1_big = _fold_conv3x3_weights(w1_oihw, width).astype(jnp.bfloat16)
    w2_big = _fold_conv3x3_weights(w2_oihw, width).astype(jnp.bfloat16)
    b1_big = jnp.tile(b1.astype(jnp.float32), width).reshape(1, width * b1.shape[0])
    b2_big = jnp.tile(b2.astype(jnp.float32), width).reshape(1, width * b2.shape[0])
    return w1_big, b1_big, w2_big, b2_big


@jax.jit
def basic_block_forward(x_nchw, w1_big, b1_big, w2_big, b2_big):
    """NCHW in, NCHW out — matches the PyTorch module's forward.
    Expects pre-folded params from prepare_basic_block_params."""
    N, C, H, W = x_nchw.shape
    WC = W * C
    assert w1_big.shape == (3 * WC, WC) and w2_big.shape == (3 * WC, WC)

    # Glue: NCHW -> lane-dense (N*H, W*C).  In a channels-last pipeline these
    # boundary transposes would live upstream, not in the hot path.
    x_flat = jnp.transpose(x_nchw, (0, 2, 3, 1)).reshape(N * H, WC)

    vmem = pl.BlockSpec(memory_space=pltpu.MemorySpace.VMEM)
    cost = pl.CostEstimate(
        flops=2 * 2 * (N * H) * (3 * WC) * WC,            # 2 convs
        transcendentals=0,
        bytes_accessed=(2 * N * H * WC) * 4               # x + out (f32)
        + (w1_big.size + w2_big.size) * 2                 # folded weights (bf16)
        + (b1_big.size + b2_big.size) * 4,                # biases (f32)
    )

    out_flat = pl.pallas_call(
        functools.partial(_basic_block_kernel, n_rows_per_image=H),
        out_shape=jax.ShapeDtypeStruct((N * H, WC), x_nchw.dtype),
        in_specs=[vmem] * 5,
        out_specs=vmem,
        cost_estimate=cost,
    )(x_flat, w1_big, b1_big, w2_big, b2_big)

    return jnp.transpose(out_flat.reshape(N, H, W, C), (0, 3, 1, 2))   # back to NCHW


def basic_block_reference(x_nchw, w1_oihw, b1, w2_oihw, b2):
    """Pure-JAX f32 reference (lax conv) in NCHW, for correctness check."""
    dn = ('NCHW', 'OIHW', 'NCHW')
    y = jax.lax.conv_general_dilated(x_nchw, w1_oihw, (1, 1),
                                     ((1, 1), (1, 1)), dimension_numbers=dn)
    y = y + b1[None, :, None, None]
    y = jnp.where(y >= 0, y, LEAKY_SLOPE * y)
    y = jax.lax.conv_general_dilated(y, w2_oihw, (1, 1),
                                     ((1, 1), (1, 1)), dimension_numbers=dn)
    y = y + b2[None, :, None, None]
    return y + x_nchw


if __name__ == "__main__":
    # BasicBlock(inplanes=8, planes=8, stride=1, downsample=None, pad=1, dilation=1)
    N, C, H, W = 2, 8, 16, 16          # W*C = 128 -> lane-dense layout

    key = jax.random.PRNGKey(0)
    kx, k1, k2, k3, k4 = jax.random.split(key, 5)

    x = jax.random.normal(kx, (N, C, H, W), jnp.float32)
    # PyTorch parameter shapes: OIHW weights, (C,) biases.
    w1 = jax.random.normal(k1, (C, C, 3, 3), jnp.float32) * 0.1
    b1 = jax.random.normal(k2, (C,), jnp.float32) * 0.1
    w2 = jax.random.normal(k3, (C, C, 3, 3), jnp.float32) * 0.1
    b2 = jax.random.normal(k4, (C,), jnp.float32) * 0.1

    # Parameter folding happens once, outside the per-call jit path.
    w1_big, b1_big, w2_big, b2_big = prepare_basic_block_params(w1, b1, w2, b2, W)

    out = jax.block_until_ready(
        basic_block_forward(x, w1_big, b1_big, w2_big, b2_big))
    ref = basic_block_reference(x, w1, b1, w2, b2)

    assert out.shape == (N, C, H, W)
    max_err = float(jnp.max(jnp.abs(out - ref)))
    # bf16 matmul operands (f32 accumulation) vs an all-f32 reference.
    assert max_err < 5e-2, f"mismatch vs reference: {max_err}"

    print("KERNEL_OK")
</pallas_src>

<mosaic_0001>
module attributes {stable_mosaic.version = 11 : i64} {
  func.func @_basic_block_kernel(%arg0: memref<32x128xf32, #tpu.memory_space<vmem>>, %arg1: memref<384x128xbf16, #tpu.memory_space<vmem>>, %arg2: memref<1x128xf32, #tpu.memory_space<vmem>>, %arg3: memref<384x128xbf16, #tpu.memory_space<vmem>>, %arg4: memref<1x128xf32, #tpu.memory_space<vmem>>, %arg5: memref<32x128xf32, #tpu.memory_space<vmem>>) attributes {dimension_semantics = [], scalar_prefetch = 0 : i64, scratch_operands = 0 : i64, tpu.core_type = #tpu.core_type<tc>} {
    %0 = tpu.iota {dimensions = array<i32: 1>} : vector<2x16x128xi32>
    %1 = vector.shape_cast %0 : vector<2x16x128xi32> to vector<32x128xi32>
    %c0_i32 = arith.constant 0 : i32
    %2 = vector.broadcast %c0_i32 : i32 to vector<32x128xi32>
    %3 = arith.cmpi ne, %1, %2 : vector<32x128xi32>
    %c15_i32 = arith.constant 15 : i32
    %4 = vector.broadcast %c15_i32 : i32 to vector<32x128xi32>
    %5 = arith.cmpi ne, %1, %4 : vector<32x128xi32>
    %cst = arith.constant 0.000000e+00 : f32
    %6 = vector.broadcast %cst : f32 to vector<32x128xf32>
    %c0 = arith.constant 0 : index
    %c0_0 = arith.constant 0 : index
    %7 = vector.load %arg0[%c0, %c0_0] : memref<32x128xf32, #tpu.memory_space<vmem>>, vector<32x128xf32>
    %c1_i32 = arith.constant 1 : i32
    %8 = tpu.dynamic_rotate %7 by %c1_i32 dim 0 : vector<32x128xf32>, i32 -> vector<32x128xf32>
    %9 = arith.select %3, %8, %6 : vector<32x128xi1>, vector<32x128xf32>
    %c31_i32 = arith.constant 31 : i32
    %10 = tpu.dynamic_rotate %7 by %c31_i32 dim 0 : vector<32x128xf32>, i32 -> vector<32x128xf32>
    %11 = arith.select %5, %10, %6 : vector<32x128xi1>, vector<32x128xf32>
    %12 = arith.truncf %9 : vector<32x128xf32> to vector<32x128xbf16>
    %13 = arith.truncf %7 : vector<32x128xf32> to vector<32x128xbf16>
    %14 = arith.truncf %11 : vector<32x128xf32> to vector<32x128xbf16>
    %15 = tpu.concatenate %12, %13, %14 in 1 : vector<32x128xbf16>, vector<32x128xbf16>, vector<32x128xbf16> -> vector<32x384xbf16>
    %c0_1 = arith.constant 0 : index
    %c0_2 = arith.constant 0 : index
    %16 = vector.load %arg1[%c0_1, %c0_2] : memref<384x128xbf16, #tpu.memory_space<vmem>>, vector<384x128xbf16>
    %cst_3 = arith.constant dense<0.000000e+00> : vector<32x128xf32>
    %17 = tpu.matmul %15, %16, %cst_3 {dimension_numbers = #tpu.dot_dimension_numbers<[1], [0], [0], [1], [0, 0, 1, 1], [], []>} : vector<32x384xbf16>, vector<384x128xbf16>, vector<32x128xf32> -> vector<32x128xf32>
    %c0_4 = arith.constant 0 : index
    %c0_5 = arith.constant 0 : index
    %18 = vector.load %arg2[%c0_4, %c0_5] : memref<1x128xf32, #tpu.memory_space<vmem>>, vector<1x128xf32>
    %19 = vector.broadcast %18 : vector<1x128xf32> to vector<32x128xf32>
    %20 = arith.addf %17, %19 : vector<32x128xf32>
    %cst_6 = arith.constant 1.000000e-01 : f32
    %21 = vector.broadcast %cst_6 : f32 to vector<32x128xf32>
    %22 = arith.mulf %21, %20 : vector<32x128xf32>
    %23 = arith.maximumf %20, %22 : vector<32x128xf32>
    %c1_i32_7 = arith.constant 1 : i32
    %24 = tpu.dynamic_rotate %23 by %c1_i32_7 dim 0 : vector<32x128xf32>, i32 -> vector<32x128xf32>
    %25 = arith.select %3, %24, %6 : vector<32x128xi1>, vector<32x128xf32>
    %c31_i32_8 = arith.constant 31 : i32
    %26 = tpu.dynamic_rotate %23 by %c31_i32_8 dim 0 : vector<32x128xf32>, i32 -> vector<32x128xf32>
    %27 = arith.select %5, %26, %6 : vector<32x128xi1>, vector<32x128xf32>
    %28 = arith.truncf %25 : vector<32x128xf32> to vector<32x128xbf16>
    %29 = arith.truncf %23 : vector<32x128xf32> to vector<32x128xbf16>
    %30 = arith.truncf %27 : vector<32x128xf32> to vector<32x128xbf16>
    %31 = tpu.concatenate %28, %29, %30 in 1 : vector<32x128xbf16>, vector<32x128xbf16>, vector<32x128xbf16> -> vector<32x384xbf16>
    %c0_9 = arith.constant 0 : index
    %c0_10 = arith.constant 0 : index
    %32 = vector.load %arg3[%c0_9, %c0_10] : memref<384x128xbf16, #tpu.memory_space<vmem>>, vector<384x128xbf16>
    %cst_11 = arith.constant dense<0.000000e+00> : vector<32x128xf32>
    %33 = tpu.matmul %31, %32, %cst_11 {dimension_numbers = #tpu.dot_dimension_numbers<[1], [0], [0], [1], [0, 0, 1, 1], [], []>} : vector<32x384xbf16>, vector<384x128xbf16>, vector<32x128xf32> -> vector<32x128xf32>
    %c0_12 = arith.constant 0 : index
    %c0_13 = arith.constant 0 : index
    %34 = vector.load %arg4[%c0_12, %c0_13] : memref<1x128xf32, #tpu.memory_space<vmem>>, vector<1x128xf32>
    %35 = vector.broadcast %34 : vector<1x128xf32> to vector<32x128xf32>
    %36 = arith.addf %33, %35 : vector<32x128xf32>
    %c0_14 = arith.constant 0 : index
    %c0_15 = arith.constant 0 : index
    %37 = vector.load %arg0[%c0_14, %c0_15] : memref<32x128xf32, #tpu.memory_space<vmem>>, vector<32x128xf32>
    %38 = arith.addf %36, %37 : vector<32x128xf32>
    %c0_16 = arith.constant 0 : index
    %c0_17 = arith.constant 0 : index
    %39 = vector.load %arg5[%c0_16, %c0_17] : memref<32x128xf32, #tpu.memory_space<vmem>>, vector<32x128xf32>
    tpu.vector_store %arg5[%c0_16, %c0_17], %38 {strides = array<i32>} : memref<32x128xf32, #tpu.memory_space<vmem>>, vector<32x128xf32>,
    return
  }
}

</mosaic_0001>

<bundles_post_ra>
// kernel: basic_block_forward.1
= control target key start
LH: loop header
LB: loop body
LE: loop exit
PB: predicated region body
PF: predicated region fallthrough
CT: control target
= control target key end

     0   :  { %v21_v13 = vlaneseq  ;;  %vm947_vm4 = vmmov 1   ;;  %s1241_s1 = inlined_call_operand.vmem [shape: bf16[384,128], index: 1, kind: input, shape index: {}]   ;;  %s1242_s0 = inlined_call_operand.vmem [shape: f32[32,128], index: 0, kind: input, shape index: {}]   ;;  %s1243_s3 = inlined_call_operand.vmem [shape: bf16[384,128], index: 3, kind: input, shape index: {}]   ;;  %s1244_s2 = inlined_call_operand.vmem [shape: f32[1,128], index: 2, kind: input, shape index: {}]   ;;  %s1245_s4 = inlined_call_operand.vmem [shape: f32[1,128], index: 4, kind: input, shape index: {}]   ;;  %s1246_s5 = inlined_call_operand.vmem [shape: f32[32,128], index: 5, kind: output, shape index: {}]  }
   0x1   :  { %v899_v0 = vld [vmem:[%s1241_s1 + $0x78] sm:$0xff]   ;;  %v901_v2 = vld [vmem:[%s1241_s1 + $0x70] sm:$0xff]   ;;  %v904_v5 = vld [vmem:[%s1241_s1 + $0x68] sm:$0xff]  }
   0x2   :  { %v900_v1 = vld [vmem:[%s1241_s1 + $0x38] sm:$0xff]   ;;  %782 = vmatprep.subr.bf16.mxu0 %v899_v0  ;;  %v903_v4 = vld [vmem:[%s1241_s1 + $0x30] sm:$0xff]   ;;  %v906_v7 = vld [vmem:[%s1241_s1 + $0x28] sm:$0xff]   ;;  %v1026_v17 = vshrl.u32 %v21_v13, 7 }
   0x3   :  { %783 = vmatpush3.bf16.msra.mxu0 %v900_v1  ;;  %v902_v3 = vld [vmem:[%s1241_s1 + $0xb8] sm:$0xff]   ;;  %v905_v6 = vld [vmem:[%s1241_s1 + $0xb0] sm:$0xff]   ;;  %v907_v8 = vld [vmem:[%s1241_s1 + $0x60] sm:$0xff]  }
   0x4   :  { %784 = vmatprep.subr.bf16.mxu0 %v901_v2  ;;  %858 = vmatprep.subr.bf16.mxu1 %v902_v3  ;;  %v908_v9 = vld [vmem:[%s1241_s1 + $0xa8] sm:$0xff]   ;;  %v909_v10 = vld [vmem:[%s1241_s1 + $0x20] sm:$0xff]   ;;  %v910_v11 = vld [vmem:[%s1241_s1 + $0x58] sm:$0xff]   ;;  %v23_v20 = vadd.s32 8, %v1026_v17  ;;  %vm24_vm0 = vcmp.ne.s32.totalorder %v1026_v17, 0  ;;  %vm36_vm1 = vcmp.lt.s32.totalorder %v1026_v17, 1 }
   0x5   :  { %859 = vmatpush3.bf16.msra.mxu1 %v902_v3  ;;  %v911_v12 = vld [vmem:[%s1241_s1 + $0xa0] sm:$0xff]   ;;  %v912_v14 = vld [vmem:[%s1241_s1 + $0x18] sm:$0xff]   ;;  %v913_v16 = vld [vmem:[%s1241_s1 + $0x50] sm:$0xff]   ;;  %vm49_vm3 = vcmp.lt.s32.totalorder %v1026_v17, 7 }
   0x6   :  { %860 = vmatprep.subr.bf16.mxu1 %v905_v6  ;;  %v914_v15 = vld [vmem:[%s1241_s1 + $0x98] sm:$0xff]   ;;  %v915_v18 = vld [vmem:[%s1241_s1 + $0x10] sm:$0xff]   ;;  %v916_v21 = vld [vmem:[%s1241_s1 + $0x48] sm:$0xff]   ;;  %vm27_vm2 = vcmp.ne.s32.totalorder %v23_v20, 15 }
   0x7   :  { %785 = vmatpush3.bf16.msra.mxu0 %v903_v4  ;;  %v917_v19 = vld [vmem:[%s1241_s1 + $0x90] sm:$0xff]   ;;  %v918_v22 = vld [vmem:[%s1241_s1 + $0x8] sm:$0xff]   ;;  %v1048_v24 = vld [vmem:[%s1242_s0] sm:$0xff] }
   0x8   :  { %786 = vmatprep.subr.bf16.mxu0 %v904_v5  ;;  %v920_v23 = vld [vmem:[%s1241_s1 + $0x88] sm:$0xff]   ;;  %v1058_v26 = vld [vmem:[%s1242_s0 + $0x18] sm:$0xff]  ;;  %v919_v27 = vld [vmem:[%s1241_s1 + $0x40] sm:$0xff]   ;;  %v32_v28 = vrot.slane %v1048_v24, 7  ;;  %v45_v35 = vrot.slane %v1048_v24, 1 }
   0x9   :  { %861 = vmatpush3.bf16.msra.mxu1 %v905_v6  ;;  %v1053_v25 = vld [vmem:[%s1242_s0 + $0x8] sm:$0xff]  ;;  %v35_v31 = vrot.slane %v1058_v26, 7  ;;  %v921_v32 = vld [vmem:[%s1241_s1] sm:$0xff]   ;;  %v1079_v34 = vld [vmem:[%s1242_s0 + $0x10] sm:$0xff]  ;;  %v48_v39 = vrot.slane %v1058_v26, 1 }
   0xa   :  { %862 = vmatprep.subr.bf16.mxu1 %v908_v9  ;;  %v33_v29 = vrot.slane %v1053_v25, 7  ;;  %v60_v30 = vpack.c.bf16 %v1053_v25, %v1048_v24  ;;  %v922_v33 = vld [vmem:[%s1241_s1 + $0x80] sm:$0xff]   ;;  %v46_v36 = vrot.slane %v1053_v25, 1  ;;  %vm1085_vm5 = vmpackc.low %vm947_vm4, %vm24_vm0  ;;  %v47_v38 = vrot.slane %v1079_v34, 1  ;;  %v923_v46 = vld [vmem:[%s1243_s3 + $0x78] sm:$0xff]  }
   0xb   :  { %787 = vmatpush3.bf16.msra.mxu0 %v906_v7  ;;  %v40_v41 = vsel %vm36_vm1, %v35_v31, %v32_v28  ;;  %vm1098_vm6 = vmpackc.low %vm27_vm2, %vm947_vm4  ;;  %v34_v45 = vrot.slane %v1079_v34, 7  ;;  %v924_v48 = vld [vmem:[%s1243_s3 + $0xb8] sm:$0xff]   ;;  %v53_v51 = vsel %vm49_vm3, %v48_v39, %v45_v35  ;;  %v61_v53 = vpack.c.bf16 %v1058_v26, %v1079_v34  ;;  %v926_v58 = vld [vmem:[%s1243_s3 + $0x70] sm:$0xff]  }
   0xc   :  { %788 = vmatprep.subr.bf16.mxu0 %v907_v8  ;;  %295 = vmatprep.mubr.bf16.mxu0 %v60_v30  ;;  %v39_v40 = vsel %vm36_vm1, %v32_v28, %v33_v29  ;;  %v52_v42 = vsel %vm49_vm3, %v45_v35, %v46_v36  ;;  %v51_v44 = vsel %vm49_vm3, %v46_v36, %v47_v38  ;;  %v925_v52 = vld [vmem:[%s1243_s3 + $0x38] sm:$0xff]   ;;  %v927_v59 = vld [vmem:[%s1243_s3 + $0xb0] sm:$0xff]   ;;  %v929_v61 = vld [vmem:[%s1243_s3 + $0x68] sm:$0xff]  }
   0xd   :  { %863 = vmatpush3.bf16.msra.mxu1 %v908_v9  ;;  %v740_v47 = vpack.c.bf16 %v51_v44, %v52_v42  ;;  %v734_v49 = vpack.c.bf16 %v39_v40, %v40_v41  ;;  %v50_v50 = vsel %vm49_vm3, %v47_v38, %v48_v39  ;;  %v37_v55 = vsel %vm36_vm1, %v34_v45, %v35_v31  ;;  %v928_v60 = vld [vmem:[%s1243_s3 + $0x30] sm:$0xff]   ;;  %v930_v62 = vld [vmem:[%s1243_s3 + $0xa8] sm:$0xff]   ;;  %v932_v0 = vld [vmem:[%s1243_s3 + $0x60] sm:$0xff]  }
   0xe   :  { %864 = vmatprep.subr.bf16.mxu1 %v911_v12  ;;  %v743_v54 = vpack.c.bf16 %v53_v51, %v50_v50  ;;  %v38_v56 = vsel %vm36_vm1, %v33_v29, %v34_v45  ;;  %v931_v63 = vld [vmem:[%s1243_s3 + $0x28] sm:$0xff]   ;;  %v933_v1 = vld [vmem:[%s1243_s3 + $0xa0] sm:$0xff]   ;;  %v935_v3 = vld [vmem:[%s1243_s3 + $0x58] sm:$0xff]  }
   0xf   :  { %789 = vmatpush3.bf16.msra.mxu0 %v909_v10  ;;  %874 = vmatprep.mubr.msk.bf16.mxu1 %vm1098_vm6, %v740_v47  ;;  %v737_v57 = vpack.c.bf16 %v37_v55, %v38_v56  ;;  %v934_v2 = vld [vmem:[%s1243_s3 + $0x20] sm:$0xff]   ;;  %v936_v4 = vld [vmem:[%s1243_s3 + $0x98] sm:$0xff]   ;;  %v938_v6 = vld [vmem:[%s1243_s3 + $0x50] sm:$0xff]  }
  0x10   :  { %790 = vmatprep.subr.bf16.mxu0 %v910_v11  ;;  %v937_v5 = vld [vmem:[%s1243_s3 + $0x18] sm:$0xff]   ;;  %v939_v7 = vld [vmem:[%s1243_s3 + $0x90] sm:$0xff]   ;;  %v941_v9 = vld [vmem:[%s1243_s3 + $0x48] sm:$0xff]  }
  0x11   :  { %865 = vmatpush3.bf16.msra.mxu1 %v911_v12  ;;  %v940_v8 = vld [vmem:[%s1243_s3 + $0x10] sm:$0xff]   ;;  %v942_v10 = vld [vmem:[%s1243_s3 + $0x88] sm:$0xff]   ;;  %v944_v12 = vld [vmem:[%s1243_s3 + $0x40] sm:$0xff]  }
  0x12   :  { %866 = vmatprep.subr.bf16.mxu1 %v914_v15  ;;  %v943_v11 = vld [vmem:[%s1243_s3 + $0x8] sm:$0xff]   ;;  %v945_v13 = vld [vmem:[%s1243_s3 + $0x80] sm:$0xff]  }
  0x13   :  { %791 = vmatpush3.bf16.msra.mxu0 %v912_v14  ;;  %v946_v14 = vld [vmem:[%s1243_s3] sm:$0xff]  }
  0x14   :  { %792 = vmatprep.subr.bf16.mxu0 %v913_v16  ;;  %v745_v43 = vld [vmem:[%s1245_s4] ss:$0 sm:$0xff] }
  0x15   :  { %867 = vmatpush3.bf16.msra.mxu1 %v914_v15 }
  0x16   :  { %868 = vmatprep.subr.bf16.mxu1 %v917_v19 }
  0x17   :  { %793 = vmatpush3.bf16.msra.mxu0 %v915_v18  ;;  %v708_v18 = vld [vmem:[%s1244_s2] ss:$0 sm:$0xff] }
  0x18   :  { %794 = vmatprep.subr.bf16.mxu0 %v916_v21 }
  0x19   :  { %869 = vmatpush3.bf16.msra.mxu1 %v917_v19 }
  0x1a   :  { %870 = vmatprep.subr.bf16.mxu1 %v920_v23 }
  0x1b   :  { %795 = vmatpush3.bf16.msra.mxu0 %v918_v22 }
  0x1c   :  { %796 = vmatprep.subr.bf16.mxu0 %v919_v27 }
  0x1d   :  { %871 = vmatpush3.bf16.msra.mxu1 %v920_v23 }
  0x1e   :  { %872 = vmatprep.subr.bf16.mxu1 %v922_v33 }
  0x1f   :  { %797 = vmatpush3.bf16.msra.mxu0 %v921_v32 }
  0x20   :  { %820 = vmatprep.subr.bf16.mxu0 %v923_v46 }
  0x21   :  { %873 = vmatpush3.bf16.msra.mxu1 %v922_v33 }
  0x22   :  { %735 = vmatmul.mubr.msk.bf16.vlgmr.msra.gmra.mxu0 %vm1085_vm5, %v734_v49  ;;  %878 = vmatprep.subr.bf16.mxu1 %v924_v48 }
  0x23   :  { %303 = vmatprep.mubr.bf16.mxu0 %v61_v53  ;;  %821 = vmatpush3.bf16.msra.mxu0 %v925_v52 }
  0x24   :  { %875 = vmatmul.mubr.msk.bf16.vlgmr.msra.gmra.mxu1 %vm1098_vm6, %v743_v54  ;;  %822 = vmatprep.subr.bf16.mxu0 %v926_v58 }
  0x25   :  { %879 = vmatpush3.bf16.msra.mxu1 %v924_v48 }
  0x26   :  { %880 = vmatprep.subr.bf16.mxu1 %v927_v59 }
  0x27   :  { %823 = vmatpush3.bf16.msra.mxu0 %v928_v60 }
  0x28   :  { %824 = vmatprep.subr.bf16.mxu0 %v929_v61 }
  0x29   :  { %881 = vmatpush3.bf16.msra.mxu1 %v927_v59 }
  0x2a   :  { %738 = vmatmul.mubr.msk.bf16.gmra.mxu0 %vm1085_vm5, %v737_v57  ;;  %882 = vmatprep.subr.bf16.mxu1 %v930_v62 }
  0x2b   :  { %825 = vmatpush3.bf16.msra.mxu0 %v931_v63 }
  0x2c   :  { %826 = vmatprep.subr.bf16.mxu0 %v932_v0 }
  0x2d   :  { %883 = vmatpush3.bf16.msra.mxu1 %v930_v62 }
  0x2e   :  { %884 = vmatprep.subr.bf16.mxu1 %v933_v1 }
  0x2f   :  { %827 = vmatpush3.bf16.msra.mxu0 %v934_v2 }
  0x30   :  { %828 = vmatprep.subr.bf16.mxu0 %v935_v3 }
  0x31   :  { %885 = vmatpush3.bf16.msra.mxu1 %v933_v1 }
  0x32   :  { %886 = vmatprep.subr.bf16.mxu1 %v936_v4 }
  0x33   :  { %829 = vmatpush3.bf16.msra.mxu0 %v937_v5 }
  0x34   :  { %830 = vmatprep.subr.bf16.mxu0 %v938_v6 }
  0x35   :  { %887 = vmatpush3.bf16.msra.mxu1 %v936_v4 }
  0x36   :  { %888 = vmatprep.subr.bf16.mxu1 %v939_v7 }
  0x37   :  { %831 = vmatpush3.bf16.msra.mxu0 %v940_v8 }
  0x38   :  { %832 = vmatprep.subr.bf16.mxu0 %v941_v9 }
  0x39   :  { %889 = vmatpush3.bf16.msra.mxu1 %v939_v7 }
  0x3a   :  { %890 = vmatprep.subr.bf16.mxu1 %v942_v10 }
  0x3b   :  { %833 = vmatpush3.bf16.msra.mxu0 %v943_v11 }
  0x3c   :  { %834 = vmatprep.subr.bf16.mxu0 %v944_v12 }
  0x3d   :  { %891 = vmatpush3.bf16.msra.mxu1 %v942_v10 }
  0x3e   :  { %892 = vmatprep.subr.bf16.mxu1 %v945_v13 }
  0x3f   :  { %835 = vmatpush3.bf16.msra.mxu0 %v946_v14 }
  0x41   :  { %893 = vmatpush3.bf16.msra.mxu1 %v945_v13 }
  0xe2   :  { %v798_v15 = vpop.f32.mrf.mxu0 }
  0xe4   :  { %v799_v16 = vpop.f32.mrf.mxu0  ;;  %v876_v20 = vpop.f32.mrf.mxu1 }
  0xe5   :  { %v800_v19 = vadd.f32 %v799_v16, %v798_v15 }
  0xe6   :  { %v801_v21 = vpop.f32.mrf.mxu0  ;;  %v346_v23 = vpop.f32.mrf.mxu1 }
  0xe7   :  { %v298_v22 = vadd.f32 %v800_v19, %v708_v18 }
  0xe8   :  { %v802_v27 = vpop.f32.mrf.mxu0  ;;  %v877_v29 = vpop.f32.mrf.mxu1 }
  0xe9   :  { %v803_v28 = vadd.f32 %v802_v27, %v801_v21  ;;  %v347_v30 = vadd.f32 %v346_v23, %v298_v22 }
  0xea   :  { %v804_v31 = vpop.f32.mrf.mxu0  ;;  %v349_v33 = vpop.f32.mrf.mxu1 }
  0xeb   :  { %v301_v32 = vadd.f32 %v803_v28, %v708_v18  ;;  %v361_v39 = vmul.f32 0.1, %v347_v30 }
  0xec   :  { %v805_v35 = vpop.f32.mrf.mxu0 }
  0xed   :  { %v806_v36 = vadd.f32 %v805_v35, %v804_v31  ;;  %v350_v38 = vadd.f32 %v349_v33, %v301_v32  ;;  %v365_v48 = vmax.f32 %v347_v30, %v361_v39 }
  0xee   :  { %v807_v40 = vpop.f32.mrf.mxu0 }
  0xef   :  { %v306_v41 = vadd.f32 %v806_v36, %v708_v18  ;;  %v362_v42 = vmul.f32 0.1, %v350_v38  ;;  %v381_v55 = vrot.slane %v365_v48, 1  ;;  %v369_v63 = vrot.slane %v365_v48, 7 }
  0xf0   :  { %v808_v44 = vpop.f32.mrf.mxu0 }
  0xf1   :  { %v355_v45 = vadd.f32 %v876_v20, %v306_v41  ;;  %v366_v46 = vmax.f32 %v350_v38, %v362_v42  ;;  %v809_v47 = vadd.f32 %v808_v44, %v807_v40 }
  0xf3   :  { %v363_v49 = vmul.f32 0.1, %v355_v45  ;;  %v309_v50 = vadd.f32 %v809_v47, %v708_v18  ;;  %v395_v51 = vpack.c.bf16 %v366_v46, %v365_v48  ;;  %v382_v53 = vrot.slane %v366_v46, 1 }
  0xf4   :  { %v370_v58 = vrot.slane %v366_v46, 7 }
  0xf5   :  { %v367_v52 = vmax.f32 %v355_v45, %v363_v49  ;;  %v358_v54 = vadd.f32 %v877_v29, %v309_v50  ;;  %630 = vmatprep.mubr.bf16.mxu0 %v395_v51  ;;  %v387_v61 = vsel %vm49_vm3, %v381_v55, %v382_v53 }
  0xf6   :  { %v375_v2 = vsel %vm36_vm1, %v369_v63, %v370_v58 }
  0xf7   :  { %v383_v56 = vrot.slane %v367_v52, 1  ;;  %v364_v57 = vmul.f32 0.1, %v358_v54  ;;  %v371_v9 = vrot.slane %v367_v52, 7 }
  0xf9   :  { %v368_v59 = vmax.f32 %v358_v54, %v364_v57  ;;  %v386_v60 = vsel %vm49_vm3, %v382_v53, %v383_v56  ;;  %v374_v11 = vsel %vm36_vm1, %v370_v58, %v371_v9 }
  0xfa   :  { %v777_v62 = vpack.c.bf16 %v386_v60, %v387_v61 }
  0xfb   :  { %v372_v0 = vrot.slane %v368_v59, 7  ;;  %v384_v1 = vrot.slane %v368_v59, 1  ;;  %v396_v8 = vpack.c.bf16 %v368_v59, %v367_v52 }
  0xfc   :  { %894 = vmatprep.mubr.msk.bf16.mxu1 %vm1098_vm6, %v777_v62 }
  0xfd   :  { %v376_v3 = vsel %vm36_vm1, %v372_v0, %v369_v63  ;;  %v385_v4 = vsel %vm49_vm3, %v383_v56, %v384_v1  ;;  %v388_v5 = vsel %vm49_vm3, %v384_v1, %v381_v55  ;;  %v373_v10 = vsel %vm36_vm1, %v371_v9, %v372_v0 }
  0xfe   :  { %v771_v6 = vpack.c.bf16 %v375_v2, %v376_v3  ;;  %v780_v7 = vpack.c.bf16 %v388_v5, %v385_v4  ;;  %v774_v12 = vpack.c.bf16 %v373_v10, %v374_v11 }
 0x100   :  { %772 = vmatmul.mubr.msk.bf16.vlgmr.msra.gmra.mxu0 %vm1085_vm5, %v771_v6  ;;  %895 = vmatmul.mubr.msk.bf16.vlgmr.msra.gmra.mxu1 %vm1098_vm6, %v780_v7 }
 0x101   :  { %638 = vmatprep.mubr.bf16.mxu0 %v396_v8 }
 0x108   :  { %775 = vmatmul.mubr.msk.bf16.gmra.mxu0 %vm1085_vm5, %v774_v12 }
 0x1c0   :  { %v836_v13 = vpop.f32.mrf.mxu0  ;;  %v896_v14 = vpop.f32.mrf.mxu1 }
 0x1c2   :  { %v837_v15 = vpop.f32.mrf.mxu0  ;;  %v681_v16 = vpop.f32.mrf.mxu1 }
 0x1c3   :  { %v838_v18 = vadd.f32 %v837_v15, %v836_v13 }
 0x1c4   :  { %v839_v19 = vpop.f32.mrf.mxu0  ;;  %v897_v21 = vpop.f32.mrf.mxu1 }
 0x1c5   :  { %v633_v20 = vadd.f32 %v838_v18, %v745_v43 }
 0x1c6   :  { %v840_v22 = vpop.f32.mrf.mxu0  ;;  %v684_v29 = vpop.f32.mrf.mxu1 }
 0x1c7   :  { %v682_v23 = vadd.f32 %v681_v16, %v633_v20  ;;  %v841_v17 = vadd.f32 %v840_v22, %v839_v19 }
 0x1c8   :  { %v842_v27 = vpop.f32.mrf.mxu0 }
 0x1c9   :  { %v696_v28 = vadd.f32 %v682_v23, %v1048_v24  ;;  %v636_v37 = vadd.f32 %v841_v17, %v745_v43 }
 0x1ca   :  { %v843_v30 = vpop.f32.mrf.mxu0 }
 0x1cb   :  { %700 = vst [vmem:[%s1246_s5] sm:$0xff] %v696_v28  ;;  %v685_v31 = vadd.f32 %v684_v29, %v636_v37  ;;  %v844_v32 = vadd.f32 %v843_v30, %v842_v27 }
 0x1cc   :  { %v845_v33 = vpop.f32.mrf.mxu0 }
 0x1cd   :  { %v697_v35 = vadd.f32 %v685_v31, %v1053_v25  ;;  %v641_v36 = vadd.f32 %v844_v32, %v745_v43 }
 0x1ce   :  { %v846_v38 = vpop.f32.mrf.mxu0 }
 0x1cf   :  { %701 = vst [vmem:[%s1246_s5 + $0x8] sm:$0xff] %v697_v35  ;;  %v690_v39 = vadd.f32 %v896_v14, %v641_v36  ;;  %v847_v24 = vadd.f32 %v846_v38, %v845_v33 }
 0x1d1   :  { %v698_v40 = vadd.f32 %v690_v39, %v1079_v34  ;;  %v644_v41 = vadd.f32 %v847_v24, %v745_v43 }
 0x1d3   :  { %702 = vst [vmem:[%s1246_s5 + $0x10] sm:$0xff] %v698_v40  ;;  %v693_v42 = vadd.f32 %v897_v21, %v644_v41 }
 0x1d5   :  { %v699_v44 = vadd.f32 %v693_v42, %v1058_v26 }
 0x1d7   :  { %703 = vst [vmem:[%s1246_s5 + $0x18] sm:$0xff] %v699_v44 }

</bundles_post_ra>
